<compile_context>
chip_gen: v7x
topology: tpu7x:2x2x1
jax: 0.10.0
libtpu: 0.0.40
codegen_flags: <defaults>
</compile_context>

<pallas_src>
import functools

import jax
import jax.numpy as jnp
import numpy as np
from jax.experimental import pallas as pl
from jax.experimental.pallas import tpu as pltpu


def _round_up(x, m):
    return -(-x // m) * m


def _project3d_kernel(p_ref, pts_ref, out_ref, *, eps, sx, sy):
    """Per-tile projection.

    p_ref   : SMEM (B, 12)         rows of P = (K @ T)[:3, :], row-major
    pts_ref : VMEM (1, 4, TR, 128) homogeneous points (x, y, z, w planes)
    out_ref : VMEM (1, 3, TR, 128) [pix_x, pix_y, z] planes
    """
    b = pl.program_id(0)

    x0 = pts_ref[0, 0]
    x1 = pts_ref[0, 1]
    x2 = pts_ref[0, 2]
    x3 = pts_ref[0, 3]

    def cam_row(i):
        # 4 scalar-broadcast multiplies + 3 adds on the VPU.
        return (p_ref[b, 4 * i + 0] * x0
                + p_ref[b, 4 * i + 1] * x1
                + p_ref[b, 4 * i + 2] * x2
                + p_ref[b, 4 * i + 3] * x3)

    cam_x = cam_row(0)
    cam_y = cam_row(1)
    z = cam_row(2)

    # Exact divide (not pl.reciprocal approx) keeps 1e-5 agreement with ref.
    inv = 1.0 / (z + eps)

    out_ref[0, 0] = cam_x * inv * sx - 1.0
    out_ref[0, 1] = cam_y * inv * sy - 1.0
    out_ref[0, 2] = z


def project3d(points, K, T, *, height, width, eps=1e-7, return_z=False):
    """Pallas implementation of Project3D.forward.

    points: [B, 4, H*W], K: [B, 4, 4], T: [B, 4, 4]
    Returns pix_coords [B, H, W, 2] (and optionally z [B, 1, H, W]).
    """
    B, four, HW = points.shape
    assert four == 4 and HW == height * width

    LANE = 128
    SUB = 8
    TR_MAX = 1024  # 1024 * 128 = 131072 lanes/step -> ~7 MiB dbl-buffered blocks

    HW_lane = _round_up(HW, LANE)
    R = HW_lane // LANE

    n_tiles = max(1, -(-R // TR_MAX))
    if B == 1 and n_tiles == 1 and R >= 2 * SUB:
        n_tiles = 2  # let both v7x TensorCores work when batch alone can't
    if n_tiles == 1:
        TR = R  # full-extent sublane block (always legal under the (8,128) rule)
    else:
        TR = _round_up(-(-R // n_tiles), SUB)
    R_pad = n_tiles * TR
    HW_pad = R_pad * LANE

    pts = points.astype(jnp.float32)
    if HW_pad != HW:
        pts = jnp.pad(pts, ((0, 0), (0, 0), (0, HW_pad - HW)))
    pts = pts.reshape(B, 4, R_pad, LANE)

    # Hoisted: P = (K @ T)[:, :3, :] -> 12 scalars per batch, kept in SMEM.
    P = jnp.matmul(K.astype(jnp.float32),
                   T.astype(jnp.float32))[:, :3, :].reshape(B, 12)

    kernel = functools.partial(
        _project3d_kernel,
        eps=float(eps),
        sx=2.0 / (float(width) - 1.0),
        sy=2.0 / (float(height) - 1.0),
    )

    out4 = pl.pallas_call(
        kernel,
        out_shape=jax.ShapeDtypeStruct((B, 3, R_pad, LANE), jnp.float32),
        grid_spec=pltpu.PrefetchScalarGridSpec(
            num_scalar_prefetch=0,
            grid=(B, n_tiles),
            in_specs=[
                # 12 P coefficients per batch, whole array resident in SMEM.
                pl.BlockSpec(memory_space=pltpu.MemorySpace.SMEM),
                # Lane/sublane-dense points tile.
                pl.BlockSpec((1, 4, TR, LANE), lambda b, j: (b, 0, j, 0)),
            ],
            out_specs=pl.BlockSpec((1, 3, TR, LANE), lambda b, j: (b, 0, j, 0)),
        ),
        compiler_params=pltpu.CompilerParams(
            dimension_semantics=("parallel", "parallel"),
            vmem_limit_bytes=32 * 1024 * 1024,
        ),
    )(P, pts)

    out_flat = out4.reshape(B, 3, HW_pad)
    if HW_pad != HW:
        out_flat = out_flat[:, :, :HW]

    # TODO(synk): the channel-last permute stays as XLA glue to match the
    # PyTorch [B,H,W,2] output; fuse into the consumer if it accepts [B,2,H,W].
    pix = out_flat[:, :2].reshape(B, 2, height, width).transpose(0, 2, 3, 1)
    if not return_z:
        return pix
    z = out_flat[:, 2:3].reshape(B, 1, height, width)
    return pix, z


def _reference(points, K, T, *, height, width, eps=1e-7):
    """Pure-JAX reference mirroring the PyTorch forward."""
    B = points.shape[0]
    P = jnp.matmul(K, T)[:, :3, :]
    cam = jnp.matmul(P, points)
    pix = cam[:, :2, :] / (cam[:, 2, :][:, None, :] + eps)
    pix = pix.reshape(B, 2, height, width).transpose(0, 2, 3, 1)
    pix = pix.at[..., 0].divide(width - 1)
    pix = pix.at[..., 1].divide(height - 1)
    pix = (pix - 0.5) * 2.0
    z = cam[:, 2, :][:, None, :].reshape(B, 1, height, width)
    return pix, z


if __name__ == "__main__":
    B, H, W = 2, 16, 16
    HW = H * W
    key = jax.random.PRNGKey(0)
    k_pts, k_T = jax.random.split(key)

    # Homogeneous 3D points: random xyz, w = 1, points placed in front of cam.
    xyz = jax.random.normal(k_pts, (B, 3, HW), dtype=jnp.float32)
    xyz = xyz.at[:, 2, :].add(5.0)  # keep depth away from zero
    points = jnp.concatenate([xyz, jnp.ones((B, 1, HW), jnp.float32)], axis=1)

    # Deterministic camera intrinsics K (4x4) and near-identity pose T.
    K = jnp.tile(
        jnp.array([[W * 1.0, 0.0, W / 2.0, 0.0],
                   [0.0, H * 1.0, H / 2.0, 0.0],
                   [0.0, 0.0, 1.0, 0.0],
                   [0.0, 0.0, 0.0, 1.0]], dtype=jnp.float32)[None],
        (B, 1, 1))
    T = (jnp.tile(jnp.eye(4, dtype=jnp.float32)[None], (B, 1, 1))
         + 0.01 * jax.random.normal(k_T, (B, 4, 4), dtype=jnp.float32))

    pix, z = project3d(points, K, T, height=H, width=W, return_z=True)
    pix = jax.block_until_ready(pix)
    z = jax.block_until_ready(z)

    pix_ref, z_ref = _reference(points, K, T, height=H, width=W)
    np.testing.assert_allclose(np.asarray(pix), np.asarray(pix_ref),
                               rtol=1e-5, atol=1e-5)
    np.testing.assert_allclose(np.asarray(z), np.asarray(z_ref),
                               rtol=1e-5, atol=1e-5)

    assert pix.shape == (B, H, W, 2) and z.shape == (B, 1, H, W)
    print("KERNEL_OK")
</pallas_src>

<mosaic_0001>
module attributes {stable_mosaic.version = 11 : i64} {
  func.func @_project3d_kernel(%arg0: i32, %arg1: i32, %arg2: memref<2x12xf32, #tpu.memory_space<smem>>, %arg3: memref<1x4x2x128xf32, #tpu.memory_space<vmem>>, %arg4: memref<1x3x2x128xf32, #tpu.memory_space<vmem>>) attributes {dimension_semantics = [#tpu.dimension_semantics<parallel>, #tpu.dimension_semantics<parallel>], iteration_bounds = array<i64: 2, 1>, scalar_prefetch = 0 : i64, scratch_operands = 0 : i64, tpu.core_type = #tpu.core_type<tc>, window_params = [{transform_indices = @transform_0, window_bounds = array<i64: 2, 12>}, {transform_indices = @transform_1, window_bounds = array<i64: 1, 4, 2, 128>}, {transform_indices = @transform_2, window_bounds = array<i64: 1, 3, 2, 128>}]} {
    %c0 = arith.constant 0 : index
    %c0_0 = arith.constant 0 : index
    %c0_1 = arith.constant 0 : index
    %c0_2 = arith.constant 0 : index
    %0 = vector.load %arg3[%c0, %c0_0, %c0_1, %c0_2] : memref<1x4x2x128xf32, #tpu.memory_space<vmem>>, vector<1x1x2x128xf32>
    %1 = vector.shape_cast %0 : vector<1x1x2x128xf32> to vector<2x128xf32>
    %c0_3 = arith.constant 0 : index
    %c1 = arith.constant 1 : index
    %c0_4 = arith.constant 0 : index
    %c0_5 = arith.constant 0 : index
    %2 = vector.load %arg3[%c0_3, %c1, %c0_4, %c0_5] : memref<1x4x2x128xf32, #tpu.memory_space<vmem>>, vector<1x1x2x128xf32>
    %3 = vector.shape_cast %2 : vector<1x1x2x128xf32> to vector<2x128xf32>
    %c0_6 = arith.constant 0 : index
    %c2 = arith.constant 2 : index
    %c0_7 = arith.constant 0 : index
    %c0_8 = arith.constant 0 : index
    %4 = vector.load %arg3[%c0_6, %c2, %c0_7, %c0_8] : memref<1x4x2x128xf32, #tpu.memory_space<vmem>>, vector<1x1x2x128xf32>
    %5 = vector.shape_cast %4 : vector<1x1x2x128xf32> to vector<2x128xf32>
    %c0_9 = arith.constant 0 : index
    %c3 = arith.constant 3 : index
    %c0_10 = arith.constant 0 : index
    %c0_11 = arith.constant 0 : index
    %6 = vector.load %arg3[%c0_9, %c3, %c0_10, %c0_11] : memref<1x4x2x128xf32, #tpu.memory_space<vmem>>, vector<1x1x2x128xf32>
    %7 = vector.shape_cast %6 : vector<1x1x2x128xf32> to vector<2x128xf32>
    %8 = arith.index_cast %arg0 : i32 to index
    %c0_12 = arith.constant 0 : index
    %9 = memref.load %arg2[%8, %c0_12] : memref<2x12xf32, #tpu.memory_space<smem>>
    %10 = vector.broadcast %9 : f32 to vector<2x128xf32>
    %11 = arith.mulf %10, %1 : vector<2x128xf32>
    %12 = arith.index_cast %arg0 : i32 to index
    %c1_13 = arith.constant 1 : index
    %13 = memref.load %arg2[%12, %c1_13] : memref<2x12xf32, #tpu.memory_space<smem>>
    %14 = vector.broadcast %13 : f32 to vector<2x128xf32>
    %15 = arith.mulf %14, %3 : vector<2x128xf32>
    %16 = arith.addf %11, %15 : vector<2x128xf32>
    %17 = arith.index_cast %arg0 : i32 to index
    %c2_14 = arith.constant 2 : index
    %18 = memref.load %arg2[%17, %c2_14] : memref<2x12xf32, #tpu.memory_space<smem>>
    %19 = vector.broadcast %18 : f32 to vector<2x128xf32>
    %20 = arith.mulf %19, %5 : vector<2x128xf32>
    %21 = arith.addf %16, %20 : vector<2x128xf32>
    %22 = arith.index_cast %arg0 : i32 to index
    %c3_15 = arith.constant 3 : index
    %23 = memref.load %arg2[%22, %c3_15] : memref<2x12xf32, #tpu.memory_space<smem>>
    %24 = vector.broadcast %23 : f32 to vector<2x128xf32>
    %25 = arith.mulf %24, %7 : vector<2x128xf32>
    %26 = arith.addf %21, %25 : vector<2x128xf32>
    %27 = arith.index_cast %arg0 : i32 to index
    %c4 = arith.constant 4 : index
    %28 = memref.load %arg2[%27, %c4] : memref<2x12xf32, #tpu.memory_space<smem>>
    %29 = vector.broadcast %28 : f32 to vector<2x128xf32>
    %30 = arith.mulf %29, %1 : vector<2x128xf32>
    %31 = arith.index_cast %arg0 : i32 to index
    %c5 = arith.constant 5 : index
    %32 = memref.load %arg2[%31, %c5] : memref<2x12xf32, #tpu.memory_space<smem>>
    %33 = vector.broadcast %32 : f32 to vector<2x128xf32>
    %34 = arith.mulf %33, %3 : vector<2x128xf32>
    %35 = arith.addf %30, %34 : vector<2x128xf32>
    %36 = arith.index_cast %arg0 : i32 to index
    %c6 = arith.constant 6 : index
    %37 = memref.load %arg2[%36, %c6] : memref<2x12xf32, #tpu.memory_space<smem>>
    %38 = vector.broadcast %37 : f32 to vector<2x128xf32>
    %39 = arith.mulf %38, %5 : vector<2x128xf32>
    %40 = arith.addf %35, %39 : vector<2x128xf32>
    %41 = arith.index_cast %arg0 : i32 to index
    %c7 = arith.constant 7 : index
    %42 = memref.load %arg2[%41, %c7] : memref<2x12xf32, #tpu.memory_space<smem>>
    %43 = vector.broadcast %42 : f32 to vector<2x128xf32>
    %44 = arith.mulf %43, %7 : vector<2x128xf32>
    %45 = arith.addf %40, %44 : vector<2x128xf32>
    %46 = arith.index_cast %arg0 : i32 to index
    %c8 = arith.constant 8 : index
    %47 = memref.load %arg2[%46, %c8] : memref<2x12xf32, #tpu.memory_space<smem>>
    %48 = vector.broadcast %47 : f32 to vector<2x128xf32>
    %49 = arith.mulf %48, %1 : vector<2x128xf32>
    %50 = arith.index_cast %arg0 : i32 to index
    %c9 = arith.constant 9 : index
    %51 = memref.load %arg2[%50, %c9] : memref<2x12xf32, #tpu.memory_space<smem>>
    %52 = vector.broadcast %51 : f32 to vector<2x128xf32>
    %53 = arith.mulf %52, %3 : vector<2x128xf32>
    %54 = arith.addf %49, %53 : vector<2x128xf32>
    %55 = arith.index_cast %arg0 : i32 to index
    %c10 = arith.constant 10 : index
    %56 = memref.load %arg2[%55, %c10] : memref<2x12xf32, #tpu.memory_space<smem>>
    %57 = vector.broadcast %56 : f32 to vector<2x128xf32>
    %58 = arith.mulf %57, %5 : vector<2x128xf32>
    %59 = arith.addf %54, %58 : vector<2x128xf32>
    %60 = arith.index_cast %arg0 : i32 to index
    %c11 = arith.constant 11 : index
    %61 = memref.load %arg2[%60, %c11] : memref<2x12xf32, #tpu.memory_space<smem>>
    %62 = vector.broadcast %61 : f32 to vector<2x128xf32>
    %63 = arith.mulf %62, %7 : vector<2x128xf32>
    %64 = arith.addf %59, %63 : vector<2x128xf32>
    %cst = arith.constant 1.000000e-07 : f32
    %65 = vector.broadcast %cst : f32 to vector<2x128xf32>
    %66 = arith.addf %64, %65 : vector<2x128xf32>
    %cst_16 = arith.constant 1.000000e+00 : f32
    %67 = vector.broadcast %cst_16 : f32 to vector<2x128xf32>
    %68 = arith.divf %67, %66 : vector<2x128xf32>
    %69 = arith.mulf %26, %68 : vector<2x128xf32>
    %cst_17 = arith.constant 0.13333334 : f32
    %70 = vector.broadcast %cst_17 : f32 to vector<2x128xf32>
    %71 = arith.mulf %69, %70 : vector<2x128xf32>
    %cst_18 = arith.constant 1.000000e+00 : f32
    %72 = vector.broadcast %cst_18 : f32 to vector<2x128xf32>
    %73 = arith.subf %71, %72 : vector<2x128xf32>
    %c0_19 = arith.constant 0 : index
    %c0_20 = arith.constant 0 : index
    %c0_21 = arith.constant 0 : index
    %c0_22 = arith.constant 0 : index
    %74 = vector.load %arg4[%c0_19, %c0_20, %c0_21, %c0_22] : memref<1x3x2x128xf32, #tpu.memory_space<vmem>>, vector<1x1x2x128xf32>
    %75 = vector.shape_cast %74 : vector<1x1x2x128xf32> to vector<2x128xf32>
    %76 = vector.shape_cast %73 : vector<2x128xf32> to vector<1x1x2x128xf32>
    tpu.vector_store %arg4[%c0_19, %c0_20, %c0_21, %c0_22], %76 {strides = array<i32>} : memref<1x3x2x128xf32, #tpu.memory_space<vmem>>, vector<1x1x2x128xf32>,
    %77 = arith.mulf %45, %68 : vector<2x128xf32>
    %cst_23 = arith.constant 0.13333334 : f32
    %78 = vector.broadcast %cst_23 : f32 to vector<2x128xf32>
    %79 = arith.mulf %77, %78 : vector<2x128xf32>
    %cst_24 = arith.constant 1.000000e+00 : f32
    %80 = vector.broadcast %cst_24 : f32 to vector<2x128xf32>
    %81 = arith.subf %79, %80 : vector<2x128xf32>
    %c0_25 = arith.constant 0 : index
    %c1_26 = arith.constant 1 : index
    %c0_27 = arith.constant 0 : index
    %c0_28 = arith.constant 0 : index
    %82 = vector.load %arg4[%c0_25, %c1_26, %c0_27, %c0_28] : memref<1x3x2x128xf32, #tpu.memory_space<vmem>>, vector<1x1x2x128xf32>
    %83 = vector.shape_cast %82 : vector<1x1x2x128xf32> to vector<2x128xf32>
    %84 = vector.shape_cast %81 : vector<2x128xf32> to vector<1x1x2x128xf32>
    tpu.vector_store %arg4[%c0_25, %c1_26, %c0_27, %c0_28], %84 {strides = array<i32>} : memref<1x3x2x128xf32, #tpu.memory_space<vmem>>, vector<1x1x2x128xf32>,
    %c0_29 = arith.constant 0 : index
    %c2_30 = arith.constant 2 : index
    %c0_31 = arith.constant 0 : index
    %c0_32 = arith.constant 0 : index
    %85 = vector.load %arg4[%c0_29, %c2_30, %c0_31, %c0_32] : memref<1x3x2x128xf32, #tpu.memory_space<vmem>>, vector<1x1x2x128xf32>
    %86 = vector.shape_cast %85 : vector<1x1x2x128xf32> to vector<2x128xf32>
    %87 = vector.shape_cast %64 : vector<2x128xf32> to vector<1x1x2x128xf32>
    tpu.vector_store %arg4[%c0_29, %c2_30, %c0_31, %c0_32], %87 {strides = array<i32>} : memref<1x3x2x128xf32, #tpu.memory_space<vmem>>, vector<1x1x2x128xf32>,
    return
  }
  func.func @transform_0(%arg0: i32, %arg1: i32) -> (i32, i32) {
    %c0_i32 = arith.constant 0 : i32
    %c0_i32_0 = arith.constant 0 : i32
    %c0_i32_1 = arith.constant 0 : i32
    return %c0_i32, %c0_i32_0 : i32, i32
  }
  func.func @transform_1(%arg0: i32, %arg1: i32) -> (i32, i32, i32, i32) {
    %c0_i32 = arith.constant 0 : i32
    %c0_i32_0 = arith.constant 0 : i32
    %c0_i32_1 = arith.constant 0 : i32
    return %arg0, %c0_i32, %arg1, %c0_i32_0 : i32, i32, i32, i32
  }
  func.func @transform_2(%arg0: i32, %arg1: i32) -> (i32, i32, i32, i32) {
    %c0_i32 = arith.constant 0 : i32
    %c0_i32_0 = arith.constant 0 : i32
    %c0_i32_1 = arith.constant 0 : i32
    return %arg0, %c0_i32, %arg1, %c0_i32_0 : i32, i32, i32, i32
  }
}

</mosaic_0001>

<bundles_post_ra>
// kernel: tpu_custom_call.1
= control target key start
LH: loop header
LB: loop body
LE: loop exit
PB: predicated region body
PF: predicated region fallthrough
CT: control target
= control target key end

     0   :  { %s864_s0 = inlined_call_operand.hbm [shape: f32[2,12], index: 0, kind: input, shape index: {}]   ;;  %s865_s1 = inlined_call_operand.hbm [shape: f32[2,4,2,128], index: 1, kind: input, shape index: {}]   ;;  %s866_s2 = inlined_call_operand.hbm [shape: f32[2,3,2,128], index: 2, kind: output, shape index: {}]  }
   0x1   :  { %871 = sst [smem:[#allocation11_spill]] %s864_s0 }
   0x2   :  { %872 = sst [smem:[#allocation12_spill]] %s865_s1 }
   0x3   :  { %7 = vsyncpa [#allocation5], 0 }
   0x4   :  { %8 = vsyncpa [#allocation3], 0 }
   0x5   :  { %10 = vsyncpa [#allocation3 + $0x1], 0 }
   0x6   :  { %11 = vsyncpa [#allocation4], 0 }
   0x7   :  { %13 = vsyncpa [#allocation4 + $0x1], 0  ;;  %s638_s9 = smov 0   ;;  %s640_s10 = smov 0  }
   0x8   :  { %s642_s11 = smov 0   ;;  %s644_s12 = smov 0  }
   0x9   :  { %s646_s13 = smov 0   ;;  %s648_s14 = smov 0  }
   0xa LB: > { %s381_s15 = sadd.s32 4294967295, %s614_s14   ;;  %s382_s16 = sadd.s32 4294967294, %s614_s14   ;;  %s614_s14 = sphi %s648_s14, %s19_s14   ;;  %s610_s13 = sphi %s646_s13, %s890_s13   ;;  %s606_s12 = sphi %s644_s12, %s889_s12   ;;  %s602_s11 = sphi %s642_s11, %s888_s11   ;;  %s598_s10 = sphi %s640_s10, %s887_s10   ;;  %s594_s9 = sphi %s638_s9, %s886_s9  }
   0xb   : > { %s61_s17 = sadd.s32 1, %s602_s11  ;;  %p68_p0 = scmp.ne.s32.totalorder %s602_s11, %s598_s10 }
   0xc   : > { %p69_p1 = scmp.eq.s32.totalorder %s614_s14, 0  ;;  %p74_p2 = scmp.ne.s32.totalorder %s598_s10, %s594_s9 }
   0xd   : > { %p676_p3 = scmp.eq.s32.totalorder %s381_s15, 0  ;;  %p100_p4 = scmp.eq.s32.totalorder %s381_s15, 1 }
   0xe   : > { %p70_p5 = por %p69_p1, %p68_p0  ;;  %p106_p6 = scmp.eq.s32.totalorder %s382_s16, 1 }
   0xf   : > { %s873_s18 = scalar_select %p676_p3, 1, 0 }
  0x10   : > { %p682_p7 = por %p676_p3, %p74_p2  ;;  %p686_p8 = por %p100_p4, %p68_p0 }
  0x11   : > { %p690_p9 = por %p106_p6, %p74_p2  ;;  %p383_p10 = scmp.ge.s32.totalorder %s614_s14, 1 }
  0x12   : > { %s874_s19 = scalar_select %p682_p7, 1, 0 }
  0x13   : > { %s875_s20 = scalar_select %p686_p8, 1, 0 }
  0x14   : > { %s876_s21 = scalar_select %p690_p9, 1, 0 }
  0x15   : > { %p113_p11 = scmp.lt.s32.totalorder %s614_s14, 3  ;;  %p427_p1 = scmp.lt.s32.totalorder %s614_s14, 2 }
  0x16   : > { %s135_s23 = sand.u32 1, %s602_s11   ;;  %s31_s25 = sadd.s32 1, %s610_s13 }
  0x17   : > { %p697_p13 = pnand %p383_p10, %p113_p11  ;;  %p705_p0 = pnand %p427_p1, %p70_p5 }
  0x18   : > { %s386_s26 = sshll.u32 %s135_s23, 3  ;;  %p33_p4 = scmp.ge.s32.totalorder %s31_s25, 2 }
  0x19   : > { %p414_p7 = pneg %p697_p13  ;;  %s879_s0 = sld [smem:[#allocation11_spill]] }
  0x1b   : > { %p415_p2 = pnand %p414_p7, %p676_p3 }
  0x1d   : > { %p487_p10 = pneg %p415_p2 }
  0x1f   : > { %s485_s29 = scalar_lea.hbm %s879_s0, 32 }
  0x20   : > { %p486_p6 = scmp.ne.s32.totalorder %s879_s0, %s485_s29  ;;  %p492_p5 = scmp.lt.u32.totalorder %s485_s29, %s879_s0 }
  0x22   : > { %p488_p11 = pnand %p487_p10, %p486_p6 }
  0x24   : > { %p489_p12 = pneg %p488_p11 }
  0x26   : > { %p494_p1 = pnand %p492_p5, %p489_p12 }
  0x28   : > { %497 = shalt.err (!%p494_p1)
}
  0x29   : > { %s616_s6 = smov [#allocation2]   ;;  %s892_s25 = smov (%p33_p4, %s31_s25), 0 }
  0x2a   : > { %417 = dma.hbm_to_smem (!%p415_p2), %s879_s0, 32, %s616_s6, [#allocation5]  }
  0x2b   : > { %s403_s15 = sshll.u32 %s610_s13, 7  ;;  %s56_s16 = ssub.s32 %s610_s13, %s892_s25 }
  0x2c   : > { %s880_s1 = sld [smem:[#allocation12_spill]]  ;;  %p59_p7 = scmp.eq.s32.totalorder %s56_s16, 0 }
  0x2d   : > { %s139_s30 = scalar_lea.vmem [#allocation6], %s386_s26  ;;  %s741_s5 = scalar_lea.sflag [#allocation3], %s135_s23 }
  0x2e   : > { %s147_s3 = sshll.u32 %s139_s30, 4  ;;  %p500_p2 = pneg %p705_p0  ;;  %s734_s3 = int_to_ptr.vmem [resolvable:$true] %s147_s3 }
  0x2f   : > { %s739_s4 = scalar_select %p59_p7, %s602_s11, %s61_s17  }
  0x32   : > { %s732_s29 = scalar_lea.hbm %s880_s1, %s403_s15  ;;  %s503_s26 = scalar_lea.hbm %s880_s1, 256 }
  0x33   : > { %s498_s6 = scalar_lea.hbm %s732_s29, 128  ;;  %p504_p10 = scmp.lt.u32.totalorder %s732_s29, %s880_s1 }
  0x34   : > { %p499_p12 = scmp.ne.s32.totalorder %s732_s29, %s498_s6  ;;  %p505_p11 = scmp.lt.u32.totalorder %s503_s26, %s498_s6 }
  0x35   : > { %p507_p1 = scmp.lt.u32.totalorder %s498_s6, %s732_s29 }
  0x36   : > { %p501_p4 = pnand %p500_p2, %p499_p12  ;;  %p506_p5 = por %p505_p11, %p504_p10 }
  0x38   : > { %p502_p6 = pneg %p501_p4  ;;  %p508_p7 = por %p507_p1, %p506_p5 }
  0x3a   : > { %p509_p9 = pnand %p508_p7, %p502_p6 }
  0x3c   : > { %512 = shalt.err (!%p509_p9)
}
  0x3d   : > { %s513_s17 = scalar_lea.vmem %s734_s3, 128  ;;  %s617_s23 = smov [#allocation6]  }
  0x3e   : > { %p514_p12 = scmp.ne.s32.totalorder %s734_s3, %s513_s17  ;;  %s518_s27 = sshll.u32 %s617_s23, 4  ;;  %s519_s27 = int_to_ptr.vmem [resolvable:$false] %s518_s27 }
  0x3f   : > { %s520_s28 = scalar_lea.vmem %s519_s27, 256  ;;  %p521_p3 = scmp.lt.s32.totalorder %s734_s3, %s519_s27 }
  0x40   : > { %p516_p4 = pnand %p514_p12, %p500_p2  ;;  %p522_p10 = scmp.lt.s32.totalorder %s520_s28, %s513_s17 }
  0x42   : > { %p517_p8 = pneg %p516_p4  ;;  %p523_p11 = por %p522_p10, %p521_p3 }
  0x44   : > { %p524_p5 = pnand %p523_p11, %p517_p8 }
  0x46   : > { %527 = shalt.err (!%p524_p5)
}
  0x47   : > { %s618_s30 = smov 32   ;;  %s619_s6 = smov 2  }
  0x48   : > { %421 = dma.hbm_to_vmem [thread:$0]  (!%p705_p0), %s732_s29, 128, %s734_s3, %s741_s5, %s618_s30, %s618_s30, %s619_s6  }
  0x49   : > { %159 = sbr.rel (%p697_p13) target bundleno = 141 (0x8d), region = 28  ;;  %p881_p9 = scmp.ne.s32.totalorder (!%p697_p13), %s873_s18, 0 }
  0x50   : > { %581 = dma.done.wait (%p881_p9), [#allocation5], 32  }
  0x51   : > { %583 = vsyncadd (%p881_p9), [#allocation5], 4294967264  ;;  %s776_s7 = sand.u32 1, %s598_s10   ;;  %p882_p3 = scmp.ne.s32.totalorder %s874_s19, 0 }
  0x52   : > { %s391_s8 = sshll.u32 %s776_s7, 3  ;;  %s166_s26 = scalar_lea.sflag [#allocation3], %s776_s7 }
  0x53   : > { %s169_s15 = scalar_lea.vmem [#allocation6], %s391_s8 }
  0x54   : > { %585 = dma.done.wait (%p882_p3), %s166_s26, 128  }
  0x55   : > { %587 = vsyncadd (%p882_p3), %s166_s26, 4294967168 }
  0x56   : > { %174 = sfence }
  0x57   : > { %s785_s22 = sshll.u32 %s606_s12, 7  ;;  %v191_v0 = vld [vmem:[%s169_s15] sm:$0x3]  ;;  %v392_v1 = vld [vmem:[%s169_s15 + $0x2] sm:$0x3]  ;;  %p883_p13 = scmp.ne.s32.totalorder %s875_s20, 0 }
  0x58   : > { %s202_s18 = sadd.s32 1, %s785_s22  ;;  %s789_s24 = sld [smem:[#allocation2 + %s785_s22]]  ;;  %v393_v2 = vld [vmem:[%s169_s15 + $0x4] sm:$0x3]  ;;  %v394_v3 = vld [vmem:[%s169_s15 + $0x6] sm:$0x3] }
  0x59   : > { %s791_s29 = sld [smem:[#allocation2 + %s202_s18]]  ;;  %s207_s19 = sadd.s32 2, %s785_s22 }
  0x5a   : > { %s236_s3 = sadd.s32 8, %s785_s22  ;;  %s240_s5 = sadd.s32 9, %s785_s22 }
  0x5b   : > { %s237_s16 = sld [smem:[#allocation2 + %s236_s3]]  ;;  %s245_s23 = sadd.s32 10, %s785_s22 }
  0x5c   : > { %s241_s17 = sld [smem:[#allocation2 + %s240_s5]]  ;;  %s250_s27 = sadd.s32 11, %s785_s22 }
  0x5d   : > { %s246_s28 = sld [smem:[#allocation2 + %s245_s23]]  ;;  %s212_s6 = sadd.s32 3, %s785_s22 }
  0x5e   : > { %s251_s30 = sld [smem:[#allocation2 + %s250_s27]]  ;;  %s217_s8 = sadd.s32 4, %s785_s22  ;;  %v200_v8 = vstv %s789_s24 }
  0x5f   : > { %s800_s26 = sld [smem:[#allocation2 + %s207_s19]]  ;;  %s221_s0 = sadd.s32 5, %s785_s22  ;;  %v204_v11 = vstv %s791_s29  ;;  %v201_v17 = vmul.f32 %v200_v8, %v191_v0 }
  0x60   : > { %s218_s18 = sld [smem:[#allocation2 + %s217_s8]]  ;;  %s226_s1 = sadd.s32 6, %s785_s22  ;;  %v205_v18 = vmul.f32 %v392_v1, %v204_v11 }
  0x61   : > { %v238_v4 = vstv %s237_s16  ;;  %s222_s3 = sld [smem:[#allocation2 + %s221_s0]]  ;;  %s231_s23 = sadd.s32 7, %s785_s22 }
  0x62   : > { %v242_v5 = vstv %s241_s17  ;;  %s227_s5 = sld [smem:[#allocation2 + %s226_s1]]  ;;  %v239_v6 = vmul.f32 %v238_v4, %v191_v0  ;;  %s404_s27 = smul.u32 6, %s776_s7  ;;  %v206_v26 = vadd.f32 %v205_v18, %v201_v17 }
  0x63   : > { %v243_v7 = vmul.f32 %v392_v1, %v242_v5  ;;  %v247_v9 = vstv %s246_s28  ;;  %s213_s19 = sld [smem:[#allocation2 + %s212_s6]]  ;;  %s405_s15 = smul.u32 96, %s606_s12 }
  0x64   : > { %v252_v10 = vstv %s251_s30  ;;  %v248_v13 = vmul.f32 %v393_v2, %v247_v9  ;;  %s232_s8 = sld [smem:[#allocation2 + %s231_s23]]  ;;  %s190_s0 = scalar_lea.vmem [#allocation7], %s404_s27 }
  0x65   : > { %v244_v12 = vadd.f32 %v243_v7, %v239_v6  ;;  %v253_v14 = vmul.f32 %v394_v3, %v252_v10  ;;  %v209_v21 = vstv %s800_s26  ;;  %s284_s1 = sshll.u32 %s190_s0, 4  ;;  %s815_s29 = scalar_lea.hbm %s866_s2, %s405_s15  ;;  %s810_s1 = int_to_ptr.vmem [resolvable:$true] %s284_s1 }
  0x66   : > { %v219_v15 = vstv %s218_s18  ;;  %v210_v27 = vmul.f32 %v393_v2, %v209_v21  ;;  %s270_s16 = scalar_lea.sflag [#allocation4], %s776_s7  ;;  %s528_s17 = scalar_lea.vmem %s810_s1, 96 }
  0x67   : > { %v249_v16 = vadd.f32 %v248_v13, %v244_v12  ;;  %v220_v19 = vmul.f32 %v219_v15, %v191_v0  ;;  %v223_v20 = vstv %s222_s3  ;;  %p529_p8 = scmp.ne.s32.totalorder %s810_s1, %s528_s17  ;;  %s620_s12 = smov [#allocation7]  }
  0x68   : > { %v224_v23 = vmul.f32 %v392_v1, %v223_v20  ;;  %v228_v24 = vstv %s227_s5  ;;  %v211_v32 = vadd.f32 %v210_v27, %v206_v26  ;;  %s532_s28 = sshll.u32 %s620_s12, 4  ;;  %s533_s28 = int_to_ptr.vmem [resolvable:$false] %s532_s28 }
  0x69   : > { %v254_v22 = vadd.f32 %v253_v14, %v249_v16  ;;  %v229_v29 = vmul.f32 %v393_v2, %v228_v24  ;;  %v214_v30 = vstv %s213_s19  ;;  %p530_p0 = pnand %p529_p8, %p883_p13  ;;  %s534_s30 = scalar_lea.vmem %s533_s28, 192 }
  0x6a   : > { %v225_v28 = vadd.f32 %v224_v23, %v220_v19  ;;  %v233_v31 = vstv %s232_s8  ;;  %v215_v33 = vmul.f32 %v394_v3, %v214_v30  ;;  %p535_p6 = scmp.lt.s32.totalorder %s810_s1, %s533_s28  ;;  %p536_p1 = scmp.lt.s32.totalorder %s534_s30, %s528_s17 }
  0x6b   : > { %v255_v25 = vadd.f32 1e-07, %v254_v22  ;;  %399 = vst [vmem:[%s190_s0 + $0x4] sm:$0x3] %v254_v22  ;;  %v234_v35 = vmul.f32 %v394_v3, %v233_v31  ;;  %p531_p2 = pneg %p530_p0 }
  0x6c   : > { %v230_v34 = vadd.f32 %v229_v29, %v225_v28  ;;  %v216_v36 = vadd.f32 %v215_v33, %v211_v32  ;;  %p537_p7 = por %p536_p1, %p535_p6 }
  0x6d   : > { %483 = vrcp.f32 %v255_v25 }
  0x6e   : > { %v235_v37 = vadd.f32 %v234_v35, %v230_v34  ;;  %p538_p12 = pnand %p537_p7, %p531_p2 }
  0x77   : > { %v484_v38 = vpop.eup %483 }
  0x78   : > { %v258_v39 = vmul.f32 %v484_v38, %v216_v36  ;;  %v262_v40 = vmul.f32 %v484_v38, %v235_v37 }
  0x7a   : > { %v259_v41 = vmul.f32 0.13333334, %v258_v39  ;;  %v263_v42 = vmul.f32 0.13333334, %v262_v40 }
  0x7c   : > { %v396_v43 = vadd.f32 -1.0, %v259_v41  ;;  %v397_v44 = vadd.f32 -1.0, %v263_v42 }
  0x7e   : > { %261 = vst [vmem:[%s190_s0] sm:$0x3] %v396_v43  ;;  %398 = vst [vmem:[%s190_s0 + $0x2] sm:$0x3] %v397_v44 }
  0x7f   : > { %541 = shalt.err (!%p538_p12)
}
  0x80   : > { %s542_s6 = scalar_lea.hbm %s815_s29, 96  ;;  %s546_s3 = scalar_lea.hbm %s866_s2, 192 }
  0x81   : > { %p543_p4 = scmp.ne.s32.totalorder %s815_s29, %s542_s6  ;;  %p547_p5 = scmp.lt.u32.totalorder %s815_s29, %s866_s2 }
  0x82   : > { %p548_p9 = scmp.lt.u32.totalorder %s546_s3, %s542_s6  ;;  %p550_p8 = scmp.lt.u32.totalorder %s542_s6, %s815_s29 }
  0x83   : > { %p544_p10 = pnand %p543_p4, %p883_p13 }
  0x84   : > { %p549_p3 = por %p548_p9, %p547_p5 }
  0x85   : > { %p545_p11 = pneg %p544_p10 }
  0x86   : > { %p551_p0 = por %p550_p8, %p549_p3 }
  0x88   : > { %p552_p2 = pnand %p551_p0, %p545_p11 }
  0x8a   : > { %555 = shalt.err (!%p552_p2)
}
  0x8b   : > { %s621_s27 = smov 32   ;;  %s622_s19 = smov 2  }
  0x8c   : > { %412 = dma.vmem_to_hbm [thread:$0]  (%p883_p13), %s810_s1, 96, %s815_s29, %s270_s16, %s621_s27, %s621_s27, %s622_s19  }
  0x8d PF: > { %s299_s8 = sand.u32 1, %s594_s9   ;;  %p884_p6 = scmp.ne.s32.totalorder %s876_s21, 0 }
  0x8e   : > { %p885_p1 = scmp.ge.s32.totalorder %s614_s14, 2  ;;  %s300_s0 = scalar_lea.sflag [#allocation4], %s299_s8 }
  0x90   : > { %p423_p7 = pnand %p885_p1, %p884_p6 }
  0x92   : > { %589 = dma.done.wait (!%p423_p7), %s300_s0, 96  }
  0x93   : > { %591 = vsyncadd (!%p423_p7), %s300_s0, 4294967200  ;;  %s19_s14 = sadd.s32 1, %s614_s14   ;;  %s886_s9 = smov %s598_s10 }
  0x94   : > { %p16_p12 = scmp.ge.s32.totalorder %s19_s14, 4   ;;  %s887_s10 = smov %s602_s11 }
  0x95   : > { %s888_s11 = smov %s739_s4  ;;  %s889_s12 = smov %s610_s13 }
  0x96   : > { %s890_s13 = smov %s892_s25  ;;  %18 = sbr.rel (!%p16_p12) target bundleno = 10 (0xa), region = 83 }
  0x9d   :  { %305 = vsyncpa [#allocation3], 1 }
  0x9e   :  { %307 = vsyncpa [#allocation3 + $0x1], 1 }
  0x9f   :  { %308 = vsyncpa [#allocation4], 1 }
  0xa0   :  { %310 = vsyncpa [#allocation4 + $0x1], 1 }
  0xa1   :  { %311 = vsyncpa [#allocation5], 1 }
  0xa2   :  { %313 = vsyncpa [#allocation5 + $0x1], 1 }

</bundles_post_ra>
